<compile_context>
chip_gen: v6e
topology: v6e:2x2x1
jax: 0.10.0
libtpu: 0.0.40
codegen_flags: <defaults>
</compile_context>

<pallas_src>
import functools

import jax
import jax.numpy as jnp
from jax.experimental import pallas as pl
from jax.experimental.pallas import tpu as pltpu


def _bag_kernel(L, tok_ref, emb_ref, wc_ref, bc_ref, wh_ref, bh_ref,
                wf_ref, bf_ref, out_ref):
    # tok_ref: (TB*L, 1) int32   token ids for this batch tile
    # emb_ref: (Vin, E)  f32     embedding table (VMEM resident, ~6.4 KB)
    # wc_ref:  (K*E, C)  f32     conv weight in im2col layout
    # bc_ref:  (1, C)            conv bias
    # wh_ref:  (C, H), bh_ref: (1, H)    hidden_layer
    # wf_ref:  (H, Vp), bf_ref: (1, Vp)  fc1, padded to lane-dense Vp
    # out_ref: (TB, Vp)
    Vin, E = emb_ref.shape
    KE, C = wc_ref.shape
    K = KE // E
    Lout = L - K + 1
    TBL = tok_ref.shape[0]
    TB = TBL // L

    # ---- fused embedding gather: one-hot matmul against the VMEM table (MXU).
    tok = tok_ref[...]                                                # (TB*L, 1)
    vocab_iota = jax.lax.broadcasted_iota(jnp.int32, (TBL, Vin), 1)   # (TB*L, Vin)
    onehot = (tok == vocab_iota).astype(jnp.float32)
    x = jnp.dot(onehot, emb_ref[...],
                preferred_element_type=jnp.float32)                   # (TB*L, E)

    # ---- im2col with static window slices; one conv matmul for the whole tile.
    # cols[b*Lout + l, k*E + e] == x[b*L + l + k, e]
    cols = jnp.concatenate(
        [jnp.concatenate(
            [x[b * L + k: b * L + k + Lout, :] for k in range(K)], axis=-1)
         for b in range(TB)],
        axis=0)                                                       # (TB*Lout, K*E)

    s = jnp.dot(cols, wc_ref[...], preferred_element_type=jnp.float32)
    s = jnp.maximum(s + bc_ref[...], 0.0)                             # (TB*Lout, C)

    # ---- max-pool over the full length, per example (cross-sublane reduce).
    pooled = jnp.concatenate(
        [jnp.max(s[b * Lout:(b + 1) * Lout, :], axis=0, keepdims=True)
         for b in range(TB)],
        axis=0)                                                       # (TB, C)

    # dropout: identity (eval mode)
    # TODO(synk): training-mode dropout not implemented (inference semantics).
    h = jnp.dot(pooled, wh_ref[...],
                preferred_element_type=jnp.float32) + bh_ref[...]     # (TB, H)
    out = jnp.dot(h, wf_ref[...],
                  preferred_element_type=jnp.float32) + bf_ref[...]   # (TB, Vp)
    out_ref[...] = out.astype(out_ref.dtype)


def bag_of_embeddings_forward(tokens, embed_table, w_conv, b_conv,
                              w_hidden, b_hidden, w_fc, b_fc, *,
                              batch_tile=None):
    """tokens: (B, L) int32. Returns logits (B, V). Fully fused forward."""
    B, L = tokens.shape
    Vin, E = embed_table.shape
    K, E2, C = w_conv.shape
    assert E2 == E
    H = w_hidden.shape[1]
    V = w_fc.shape[1]
    Lout = L - K + 1
    assert Lout >= 1

    # Batch tile: whole batch in one grid step when small; otherwise 8-row
    # (sublane-aligned) tiles on a parallel axis (lets v7x shard across TCs).
    TB = batch_tile if batch_tile is not None else (B if B <= 8 else 8)
    assert B % TB == 0, "batch must be divisible by the batch tile"

    # Lane-dense output slab: pad fc1 out-dim up to a multiple of 128 lanes.
    Vp = max(128, ((V + 127) // 128) * 128)
    w_fc_p = jnp.pad(w_fc.astype(jnp.float32), ((0, 0), (0, Vp - V)))
    b_fc_p = jnp.pad(b_fc.astype(jnp.float32).reshape(1, V),
                     ((0, 0), (0, Vp - V)))

    tok_flat = tokens.reshape(B * L, 1).astype(jnp.int32)
    wc_flat = w_conv.astype(jnp.float32).reshape(K * E, C)   # im2col layout
    bc = b_conv.astype(jnp.float32).reshape(1, C)
    bh = b_hidden.astype(jnp.float32).reshape(1, H)

    out = pl.pallas_call(
        functools.partial(_bag_kernel, L),
        out_shape=jax.ShapeDtypeStruct((B, Vp), jnp.float32),
        grid=(B // TB,),
        in_specs=[
            pl.BlockSpec((TB * L, 1), lambda i: (i, 0)),   # token ids (per tile)
            pl.BlockSpec((Vin, E), lambda i: (0, 0)),      # embedding table
            pl.BlockSpec((K * E, C), lambda i: (0, 0)),    # conv weight (im2col)
            pl.BlockSpec((1, C), lambda i: (0, 0)),        # conv bias
            pl.BlockSpec((C, H), lambda i: (0, 0)),        # hidden weight
            pl.BlockSpec((1, H), lambda i: (0, 0)),        # hidden bias
            pl.BlockSpec((H, Vp), lambda i: (0, 0)),       # fc1 weight (padded)
            pl.BlockSpec((1, Vp), lambda i: (0, 0)),       # fc1 bias (padded)
        ],
        out_specs=pl.BlockSpec((TB, Vp), lambda i: (i, 0)),
        compiler_params=pltpu.CompilerParams(
            dimension_semantics=("parallel",)),
    )(tok_flat, embed_table.astype(jnp.float32), wc_flat, bc,
      w_hidden.astype(jnp.float32), bh, w_fc_p, b_fc_p)

    return out[:, :V]


def reference_forward(tokens, embed_table, w_conv, b_conv,
                      w_hidden, b_hidden, w_fc, b_fc):
    """Pure-JAX reference of the PyTorch forward (eval mode)."""
    x = jnp.take(embed_table, tokens, axis=0).astype(jnp.float32)  # (B, L, E)
    K = w_conv.shape[0]
    L = x.shape[1]
    Lout = L - K + 1
    windows = jnp.stack([x[:, k:k + Lout, :] for k in range(K)], axis=2)  # (B,Lout,K,E)
    s = jnp.einsum('blke,keo->blo', windows, w_conv) + b_conv             # (B,Lout,C)
    s = jnp.maximum(s, 0.0)
    pooled = jnp.max(s, axis=1)                                           # (B, C)
    h = pooled @ w_hidden + b_hidden
    return h @ w_fc + b_fc


if __name__ == "__main__":
    # Module hyperparameters (small, consistent with the forward pass).
    input_vocab_size = 50
    output_vocab_size = 16
    embed_dim = 32
    hidden_units = 32
    out_size = 8        # conv output channels C
    kernel = 3          # conv kernel height K
    batch = 2
    seq_len = 8

    key = jax.random.PRNGKey(0)
    k_emb, k_wc, k_bc, k_wh, k_bh, k_wf, k_bf, k_tok = jax.random.split(key, 8)

    # Deterministic synthetic parameters (shapes match nn.Module __init__):
    #   nn.Embedding(input_vocab_size, embed_dim)      -> (Vin, E)
    #   nn.Conv2d(1, out_size, (K, embed_dim)).weight  -> (C,1,K,E); stored as (K, E, C)
    #   nn.Linear(out_size, hidden_units)              -> stored as (C, H)
    #   nn.Linear(hidden_units, output_vocab_size)     -> stored as (H, V)
    embed_table = jax.random.normal(k_emb, (input_vocab_size, embed_dim), jnp.float32) * 0.1
    w_conv = jax.random.normal(k_wc, (kernel, embed_dim, out_size), jnp.float32) * 0.1
    b_conv = jax.random.normal(k_bc, (1, out_size), jnp.float32) * 0.1
    w_hidden = jax.random.normal(k_wh, (out_size, hidden_units), jnp.float32) * 0.1
    b_hidden = jax.random.normal(k_bh, (1, hidden_units), jnp.float32) * 0.1
    w_fc = jax.random.normal(k_wf, (hidden_units, output_vocab_size), jnp.float32) * 0.1
    b_fc = jax.random.normal(k_bf, (1, output_vocab_size), jnp.float32) * 0.1

    tokens = jax.random.randint(k_tok, (batch, seq_len), 0, input_vocab_size, jnp.int32)

    out = bag_of_embeddings_forward(tokens, embed_table, w_conv, b_conv,
                                    w_hidden, b_hidden, w_fc, b_fc)
    out = jax.block_until_ready(out)

    ref = reference_forward(tokens, embed_table, w_conv, b_conv,
                            w_hidden, b_hidden, w_fc, b_fc)
    assert out.shape == (batch, output_vocab_size)
    assert jnp.allclose(out, ref, rtol=1e-5, atol=1e-5), "mismatch vs reference"

    print("KERNEL_OK")
</pallas_src>

<mosaic_0001>
module attributes {stable_mosaic.version = 11 : i64} {
  func.func @_bag_kernel(%arg0: i32, %arg1: memref<16x1xi32, #tpu.memory_space<vmem>>, %arg2: memref<50x32xf32, #tpu.memory_space<vmem>>, %arg3: memref<96x8xf32, #tpu.memory_space<vmem>>, %arg4: memref<1x8xf32, #tpu.memory_space<vmem>>, %arg5: memref<8x32xf32, #tpu.memory_space<vmem>>, %arg6: memref<1x32xf32, #tpu.memory_space<vmem>>, %arg7: memref<32x128xf32, #tpu.memory_space<vmem>>, %arg8: memref<1x128xf32, #tpu.memory_space<vmem>>, %arg9: memref<2x128xf32, #tpu.memory_space<vmem>>) attributes {dimension_semantics = [#tpu.dimension_semantics<parallel>], iteration_bounds = array<i64: 1>, scalar_prefetch = 0 : i64, scratch_operands = 0 : i64, tpu.core_type = #tpu.core_type<tc>, window_params = [{transform_indices = @transform_0, window_bounds = array<i64: 16, 1>}, {pipeline_mode = #tpu.pipeline_mode<synchronous>, transform_indices = @transform_1, window_bounds = array<i64: 50, 32>}, {pipeline_mode = #tpu.pipeline_mode<synchronous>, transform_indices = @transform_2, window_bounds = array<i64: 96, 8>}, {pipeline_mode = #tpu.pipeline_mode<synchronous>, transform_indices = @transform_3, window_bounds = array<i64: 1, 8>}, {pipeline_mode = #tpu.pipeline_mode<synchronous>, transform_indices = @transform_4, window_bounds = array<i64: 8, 32>}, {pipeline_mode = #tpu.pipeline_mode<synchronous>, transform_indices = @transform_5, window_bounds = array<i64: 1, 32>}, {pipeline_mode = #tpu.pipeline_mode<synchronous>, transform_indices = @transform_6, window_bounds = array<i64: 32, 128>}, {pipeline_mode = #tpu.pipeline_mode<synchronous>, transform_indices = @transform_7, window_bounds = array<i64: 1, 128>}, {transform_indices = @transform_8, window_bounds = array<i64: 2, 128>}]} {
    %c0 = arith.constant 0 : index
    %c0_0 = arith.constant 0 : index
    %0 = vector.load %arg1[%c0, %c0_0] : memref<16x1xi32, #tpu.memory_space<vmem>>, vector<16x1xi32>
    %1 = tpu.iota {dimensions = array<i32: 1>} : vector<16x50xi32>
    %2 = vector.broadcast %0 : vector<16x1xi32> to vector<16x50xi32>
    %3 = arith.cmpi eq, %2, %1 : vector<16x50xi32>
    %4 = arith.extui %3 : vector<16x50xi1> to vector<16x50xi32>
    %5 = arith.sitofp %4 : vector<16x50xi32> to vector<16x50xf32>
    %c0_1 = arith.constant 0 : index
    %c0_2 = arith.constant 0 : index
    %6 = vector.load %arg2[%c0_1, %c0_2] : memref<50x32xf32, #tpu.memory_space<vmem>>, vector<50x32xf32>
    %cst = arith.constant dense<0.000000e+00> : vector<16x32xf32>
    %7 = tpu.matmul %5, %6, %cst {dimension_numbers = #tpu.dot_dimension_numbers<[1], [0], [0], [1], [0, 0, 1, 1], [], []>} : vector<16x50xf32>, vector<50x32xf32>, vector<16x32xf32> -> vector<16x32xf32>
    %8 = vector.extract_strided_slice %7 {offsets = [0, 0], sizes = [6, 32], strides = [1, 1]} : vector<16x32xf32> to vector<6x32xf32>
    %9 = vector.extract_strided_slice %7 {offsets = [1, 0], sizes = [6, 32], strides = [1, 1]} : vector<16x32xf32> to vector<6x32xf32>
    %10 = vector.extract_strided_slice %7 {offsets = [2, 0], sizes = [6, 32], strides = [1, 1]} : vector<16x32xf32> to vector<6x32xf32>
    %11 = tpu.concatenate %8, %9, %10 in 1 : vector<6x32xf32>, vector<6x32xf32>, vector<6x32xf32> -> vector<6x96xf32>
    %12 = vector.extract_strided_slice %7 {offsets = [8, 0], sizes = [6, 32], strides = [1, 1]} : vector<16x32xf32> to vector<6x32xf32>
    %13 = vector.extract_strided_slice %7 {offsets = [9, 0], sizes = [6, 32], strides = [1, 1]} : vector<16x32xf32> to vector<6x32xf32>
    %14 = vector.extract_strided_slice %7 {offsets = [10, 0], sizes = [6, 32], strides = [1, 1]} : vector<16x32xf32> to vector<6x32xf32>
    %15 = tpu.concatenate %12, %13, %14 in 1 : vector<6x32xf32>, vector<6x32xf32>, vector<6x32xf32> -> vector<6x96xf32>
    %16 = tpu.concatenate %11, %15 in 0 : vector<6x96xf32>, vector<6x96xf32> -> vector<12x96xf32>
    %c0_3 = arith.constant 0 : index
    %c0_4 = arith.constant 0 : index
    %17 = vector.load %arg3[%c0_3, %c0_4] : memref<96x8xf32, #tpu.memory_space<vmem>>, vector<96x8xf32>
    %cst_5 = arith.constant dense<0.000000e+00> : vector<12x8xf32>
    %18 = tpu.matmul %16, %17, %cst_5 {dimension_numbers = #tpu.dot_dimension_numbers<[1], [0], [0], [1], [0, 0, 1, 1], [], []>} : vector<12x96xf32>, vector<96x8xf32>, vector<12x8xf32> -> vector<12x8xf32>
    %c0_6 = arith.constant 0 : index
    %c0_7 = arith.constant 0 : index
    %19 = vector.load %arg4[%c0_6, %c0_7] : memref<1x8xf32, #tpu.memory_space<vmem>>, vector<1x8xf32>
    %20 = vector.broadcast %19 : vector<1x8xf32> to vector<12x8xf32>
    %21 = arith.addf %18, %20 : vector<12x8xf32>
    %cst_8 = arith.constant 0.000000e+00 : f32
    %22 = vector.broadcast %cst_8 : f32 to vector<12x8xf32>
    %23 = arith.maximumf %21, %22 : vector<12x8xf32>
    %24 = vector.extract_strided_slice %23 {offsets = [0, 0], sizes = [6, 8], strides = [1, 1]} : vector<12x8xf32> to vector<6x8xf32>
    %cst_9 = arith.constant dense<0xFF800000> : vector<8xf32>
    %25 = vector.multi_reduction <maximumf>, %24, %cst_9 [0] : vector<6x8xf32> to vector<8xf32>
    %26 = vector.shape_cast %25 : vector<8xf32> to vector<1x8xf32>
    %27 = vector.extract_strided_slice %23 {offsets = [6, 0], sizes = [6, 8], strides = [1, 1]} : vector<12x8xf32> to vector<6x8xf32>
    %cst_10 = arith.constant dense<0xFF800000> : vector<8xf32>
    %28 = vector.multi_reduction <maximumf>, %27, %cst_10 [0] : vector<6x8xf32> to vector<8xf32>
    %29 = vector.shape_cast %28 : vector<8xf32> to vector<1x8xf32>
    %30 = tpu.concatenate %26, %29 in 0 : vector<1x8xf32>, vector<1x8xf32> -> vector<2x8xf32>
    %c0_11 = arith.constant 0 : index
    %c0_12 = arith.constant 0 : index
    %31 = vector.load %arg5[%c0_11, %c0_12] : memref<8x32xf32, #tpu.memory_space<vmem>>, vector<8x32xf32>
    %cst_13 = arith.constant dense<0.000000e+00> : vector<2x32xf32>
    %32 = tpu.matmul %30, %31, %cst_13 {dimension_numbers = #tpu.dot_dimension_numbers<[1], [0], [0], [1], [0, 0, 1, 1], [], []>} : vector<2x8xf32>, vector<8x32xf32>, vector<2x32xf32> -> vector<2x32xf32>
    %c0_14 = arith.constant 0 : index
    %c0_15 = arith.constant 0 : index
    %33 = vector.load %arg6[%c0_14, %c0_15] : memref<1x32xf32, #tpu.memory_space<vmem>>, vector<1x32xf32>
    %34 = vector.broadcast %33 : vector<1x32xf32> to vector<2x32xf32>
    %35 = arith.addf %32, %34 : vector<2x32xf32>
    %c0_16 = arith.constant 0 : index
    %c0_17 = arith.constant 0 : index
    %36 = vector.load %arg7[%c0_16, %c0_17] : memref<32x128xf32, #tpu.memory_space<vmem>>, vector<32x128xf32>
    %cst_18 = arith.constant dense<0.000000e+00> : vector<2x128xf32>
    %37 = tpu.matmul %35, %36, %cst_18 {dimension_numbers = #tpu.dot_dimension_numbers<[1], [0], [0], [1], [0, 0, 1, 1], [], []>} : vector<2x32xf32>, vector<32x128xf32>, vector<2x128xf32> -> vector<2x128xf32>
    %c0_19 = arith.constant 0 : index
    %c0_20 = arith.constant 0 : index
    %38 = vector.load %arg8[%c0_19, %c0_20] : memref<1x128xf32, #tpu.memory_space<vmem>>, vector<1x128xf32>
    %39 = vector.broadcast %38 : vector<1x128xf32> to vector<2x128xf32>
    %40 = arith.addf %37, %39 : vector<2x128xf32>
    %c0_21 = arith.constant 0 : index
    %c0_22 = arith.constant 0 : index
    %41 = vector.load %arg9[%c0_21, %c0_22] : memref<2x128xf32, #tpu.memory_space<vmem>>, vector<2x128xf32>
    tpu.vector_store %arg9[%c0_21, %c0_22], %40 {strides = array<i32>} : memref<2x128xf32, #tpu.memory_space<vmem>>, vector<2x128xf32>,
    return
  }
  func.func @transform_0(%arg0: i32) -> (i32, i32) {
    %c0_i32 = arith.constant 0 : i32
    %c0_i32_0 = arith.constant 0 : i32
    return %arg0, %c0_i32 : i32, i32
  }
  func.func @transform_1(%arg0: i32) -> (i32, i32) {
    %c0_i32 = arith.constant 0 : i32
    %c0_i32_0 = arith.constant 0 : i32
    %c0_i32_1 = arith.constant 0 : i32
    return %c0_i32, %c0_i32_0 : i32, i32
  }
  func.func @transform_2(%arg0: i32) -> (i32, i32) {
    %c0_i32 = arith.constant 0 : i32
    %c0_i32_0 = arith.constant 0 : i32
    %c0_i32_1 = arith.constant 0 : i32
    return %c0_i32, %c0_i32_0 : i32, i32
  }
  func.func @transform_3(%arg0: i32) -> (i32, i32) {
    %c0_i32 = arith.constant 0 : i32
    %c0_i32_0 = arith.constant 0 : i32
    %c0_i32_1 = arith.constant 0 : i32
    return %c0_i32, %c0_i32_0 : i32, i32
  }
  func.func @transform_4(%arg0: i32) -> (i32, i32) {
    %c0_i32 = arith.constant 0 : i32
    %c0_i32_0 = arith.constant 0 : i32
    %c0_i32_1 = arith.constant 0 : i32
    return %c0_i32, %c0_i32_0 : i32, i32
  }
  func.func @transform_5(%arg0: i32) -> (i32, i32) {
    %c0_i32 = arith.constant 0 : i32
    %c0_i32_0 = arith.constant 0 : i32
    %c0_i32_1 = arith.constant 0 : i32
    return %c0_i32, %c0_i32_0 : i32, i32
  }
  func.func @transform_6(%arg0: i32) -> (i32, i32) {
    %c0_i32 = arith.constant 0 : i32
    %c0_i32_0 = arith.constant 0 : i32
    %c0_i32_1 = arith.constant 0 : i32
    return %c0_i32, %c0_i32_0 : i32, i32
  }
  func.func @transform_7(%arg0: i32) -> (i32, i32) {
    %c0_i32 = arith.constant 0 : i32
    %c0_i32_0 = arith.constant 0 : i32
    %c0_i32_1 = arith.constant 0 : i32
    return %c0_i32, %c0_i32_0 : i32, i32
  }
  func.func @transform_8(%arg0: i32) -> (i32, i32) {
    %c0_i32 = arith.constant 0 : i32
    %c0_i32_0 = arith.constant 0 : i32
    return %arg0, %c0_i32 : i32, i32
  }
}

</mosaic_0001>

<bundles_post_ra>
// kernel: tpu_custom_call.1
= control target key start
LH: loop header
LB: loop body
LE: loop exit
PB: predicated region body
PF: predicated region fallthrough
CT: control target
= control target key end

     0   :  { %vm60_vm0 = vcmask 1041408   ;;  %v603_v2 = vmov 0   ;;  %s758_s0 = inlined_call_operand.vmem [shape: s32[16,1], index: 0, kind: input, shape index: {}]   ;;  %s759_s1 = inlined_call_operand.vmem [shape: f32[50,32], index: 1, kind: input, shape index: {}]   ;;  %s760_s2 = inlined_call_operand.vmem [shape: f32[96,8], index: 2, kind: input, shape index: {}]   ;;  %s761_s3 = inlined_call_operand.vmem [shape: f32[1,8], index: 3, kind: input, shape index: {}]   ;;  %s762_s4 = inlined_call_operand.vmem [shape: f32[8,32], index: 4, kind: input, shape index: {}]   ;;  %s763_s5 = inlined_call_operand.vmem [shape: f32[1,32], index: 5, kind: input, shape index: {}]   ;;  %s764_s6 = inlined_call_operand.vmem [shape: f32[32,128], index: 6, kind: input, shape index: {}]   ;;  %s765_s7 = inlined_call_operand.vmem [shape: f32[1,128], index: 7, kind: input, shape index: {}]   ;;  %s766_s8 = inlined_call_operand.hbm [shape: f32[2,128], index: 8, kind: output, shape index: {}]  }
   0x1   :  { %v30_v0 = vld [vmem:[%s758_s0] sm:$0xff]  ;;  %v52_v1 = vld [vmem:[%s759_s1 + $0x30] sm:$0x3]  ;;  %580 = vset.pattern.permute.xlu0 %v603_v2  ;;  %v51_v3 = vld [vmem:[%s759_s1 + $0x28] sm:$0xff] }
   0x2   :  { %514 = vmatprep.subr.msk.mxu0 %vm60_vm0, %v52_v1  ;;  %35 = vperm.xlu0 %580, %v30_v0   ;;  %v50_v4 = vld [vmem:[%s759_s1 + $0x20] sm:$0xff]  ;;  %v31_v5 = vld [vmem:[%s758_s0 + $0x8] sm:$0xff] }
   0x3   :  { %515 = vmatpush3.msk.msra.mxu0 %vm60_vm0, %v52_v1 }
   0x4   :  { %516 = vmatprep.subr.mxu0 %v51_v3 }
   0x5   :  { %13 = vsyncpa [#allocation3], 0  ;;  %517 = vmatpush3.msra.mxu0 %v51_v3  ;;  %v49_v6 = vld [vmem:[%s759_s1 + $0x18] sm:$0xff]  ;;  %v48_v7 = vld [vmem:[%s759_s1 + $0x10] sm:$0xff]  ;;  %v604_v10 = vmov 0.0   ;;  %v32_v11 = vlaneseq  ;;  %vm53_vm1 = vcmask 408576  }
   0x6   :  { %518 = vmatprep.subr.mxu0 %v50_v4  ;;  %38 = vperm.xlu0 %580, %v31_v5   ;;  %v47_v8 = vld [vmem:[%s759_s1 + $0x8] sm:$0xff]  ;;  %v46_v9 = vld [vmem:[%s759_s1] sm:$0xff]  ;;  %v179_v17 = vld [vmem:[%s760_s2 + $0x58] sm:$0xff]  ;;  %s605_s1 = smov 32   ;;  %s606_s22 = smov 64   ;;  %vm148_vm4 = vcmask 261120  }
   0x7   :  { %519 = vmatpush3.msra.mxu0 %v50_v4  ;;  %v33_v12 = vand.u32 127, %v32_v11  ;;  %v178_v18 = vld [vmem:[%s760_s2 + $0x50] sm:$0xff]  ;;  %531 = vmatprep.subr.mxu1 %v179_v17  ;;  %v177_v19 = vld [vmem:[%s760_s2 + $0x48] sm:$0xff]  ;;  %v176_v20 = vld [vmem:[%s760_s2 + $0x40] sm:$0xff]  ;;  %vm150_vm5 = vcmask 523264   ;;  %vm166_vm6 = vcmask 1045504  }
   0x8   :  { %520 = vmatprep.subr.mxu0 %v49_v6  ;;  %532 = vmatpush3.msra.mxu1 %v179_v17  ;;  %v175_v21 = vld [vmem:[%s760_s2 + $0x38] sm:$0xff]  ;;  %v174_v22 = vld [vmem:[%s760_s2 + $0x30] sm:$0xff]  ;;  %v173_v23 = vld [vmem:[%s760_s2 + $0x28] sm:$0xff]  ;;  %vm187_vm7 = vcmask 785408   ;;  %vm607_vm8 = vmmov 0   ;;  %vm280_vm9 = vcmask 60416  }
   0x9   :  { %521 = vmatpush3.msra.mxu0 %v49_v6  ;;  %533 = vmatprep.subr.mxu1 %v178_v18  ;;  %v172_v24 = vld [vmem:[%s760_s2 + $0x20] sm:$0xff]  ;;  %v171_v25 = vld [vmem:[%s760_s2 + $0x18] sm:$0xff]  ;;  %v170_v26 = vld [vmem:[%s760_s2 + $0x10] sm:$0xff]  ;;  %vm270_vm10 = vcmask 62464   ;;  %vm278_vm11 = vcmask 64518   ;;  %vm289_vm12 = vcmask 1040384  }
   0xa   :  { %522 = vmatprep.subr.mxu0 %v48_v7  ;;  %534 = vmatpush3.msra.mxu1 %v178_v18  ;;  %v169_v27 = vld [vmem:[%s760_s2 + $0x8] sm:$0xff]  ;;  %v168_v28 = vld [vmem:[%s760_s2] sm:$0xff]  ;;  %vm299_vm13 = vcmask 64512   ;;  %v376_v5 = vld [vmem:[%s764_s6 + $0x18] sm:$0xff]  ;;  %s608_s14 = smov [#allocation2]  }
   0xb   :  { %523 = vmatpush3.msra.mxu0 %v48_v7  ;;  %535 = vmatprep.subr.mxu1 %v177_v19  ;;  %v291_v45 = vld [vmem:[%s762_s4] sm:$0xff]  ;;  %v375_v7 = vld [vmem:[%s764_s6 + $0x10] sm:$0xff]  ;;  %s464_s15 = sshll.u32 %s608_s14, 4  ;;  %s465_s15 = int_to_ptr.vmem [resolvable:$true] %s464_s15 }
   0xc   :  { %524 = vmatprep.subr.mxu0 %v47_v8  ;;  %536 = vmatpush3.msra.mxu1 %v177_v19  ;;  %v477_v46 = vld [vmem:[%s761_s3] ss:$0 sm:$0xff]  ;;  %p586_p1 = scmp.lt.s32.totalorder %s465_s15, %s465_s15 }
   0xd   :  { %525 = vmatpush3.msra.mxu0 %v47_v8  ;;  %537 = vmatprep.subr.mxu1 %v176_v20  ;;  %v374_v8 = vld [vmem:[%s764_s6 + $0x8] sm:$0xff]  ;;  %v480_v11 = vld [vmem:[%s763_s5] ss:$0 sm:$0xff] }
   0xe   :  { %526 = vmatprep.subr.mxu0 %v46_v9  ;;  %538 = vmatpush3.msra.mxu1 %v176_v20 }
   0xf   :  { %527 = vmatpush3.msra.mxu0 %v46_v9  ;;  %539 = vmatprep.subr.mxu1 %v175_v21  ;;  %v373_v9 = vld [vmem:[%s764_s6] sm:$0xff]  ;;  %s581_s6 = scalar_lea.vmem %s465_s15, 32 }
  0x10   :  { %558 = vmatprep.subr.mxu0 %v604_v10  ;;  %540 = vmatpush3.msra.mxu1 %v175_v21  ;;  %p582_p0 = scmp.ne.s32.totalorder %s465_s15, %s581_s6  ;;  %p587_p2 = scmp.lt.s32.totalorder %s581_s6, %s581_s6 }
  0x11   :  { %541 = vmatprep.subr.mxu1 %v174_v22 }
  0x12   :  { %542 = vmatpush3.msra.mxu1 %v174_v22  ;;  %p588_p3 = por %p587_p2, %p586_p1 }
  0x13   :  { %543 = vmatprep.subr.mxu1 %v173_v23 }
  0x14   :  { %544 = vmatpush3.msra.mxu1 %v173_v23  ;;  %p589_p4 = pnand %p588_p3, %p582_p0 }
  0x15   :  { %545 = vmatprep.subr.mxu1 %v172_v24 }
  0x16   :  { %546 = vmatpush3.msra.mxu1 %v172_v24 }
  0x17   :  { %547 = vmatprep.subr.mxu1 %v171_v25 }
  0x18   :  { %548 = vmatpush3.msra.mxu1 %v171_v25 }
  0x19   :  { %549 = vmatprep.subr.mxu1 %v170_v26 }
  0x1a   :  { %550 = vmatpush3.msra.mxu1 %v170_v26 }
  0x1b   :  { %551 = vmatprep.subr.mxu1 %v169_v27 }
  0x1c   :  { %552 = vmatpush3.msra.mxu1 %v169_v27 }
  0x1d   :  { %553 = vmatprep.subr.mxu1 %v168_v28 }
  0x1e   :  { %554 = vmatpush3.msra.mxu1 %v168_v28 }
  0x7d   :  { %v36_v13 = vpop.permute.xlu0 %35 }
  0x7e   :  { %vm40_vm2 = vcmp.eq.s32.totalorder %v36_v13, %v33_v12 }
  0x7f   :  { %v472_v14 = vsel %vm40_vm2, 1.0, %v604_v10 }
  0x80   :  { %528 = vmatprep.mubr.msk.f32.mxu0 %vm53_vm1, %v472_v14 }
  0x81   :  { %v39_v15 = vpop.permute.xlu0 %38 }
  0x82   :  { %vm41_vm3 = vcmp.eq.s32.totalorder %v39_v15, %v33_v12  ;;  %v482_v15 = vld [vmem:[%s765_s7] ss:$0 sm:$0xff] }
  0x83   :  { %v473_v16 = vsel %vm41_vm3, 1.0, %v604_v10 }
  0x84   :  { %529 = vmatmul.mubr.msk.f32.vlgmr.msra.gmra.mxu0 %vm53_vm1, %v473_v16 }
  0x85   :  { %559 = vmatpush3.msra.mxu0 %v291_v45  ;;  %560 = vmatprep.mubr.msk.f32.mxu0 %vm607_vm8, %v604_v10 }
  0x86   :  { %563 = vmatprep.subr.mxu0 %v604_v10 }
 0x144   :  { %v530_v29 = vpop.f32.mrf.mxu0 }
 0x145   :  { %v153_v30 = vrot.slane %v530_v29, 1  ;;  %v157_v33 = vrot.slane %v530_v29, 2 }
 0x146   :  { %v130_v31 = vpop.f32.mrf.mxu0 }
 0x147   :  { %v140_v32 = vrot.slane %v130_v31, 1  ;;  %154 = vrot.lane.b32.xlu1 %v153_v30, %s605_s1  ;;  %v144_v34 = vrot.slane %v130_v31, 2 }
 0x149   :  { %141 = vrot.lane.b32.xlu0 %v140_v32, %s605_s1 }
 0x14b   :  { %158 = vrot.lane.b32.xlu1 %v157_v33, %s606_s22 }
 0x14f   :  { %145 = vrot.lane.b32.xlu1 %v144_v34, %s606_s22 }
 0x1b9   :  { %v155_v35 = vpop.permute.xlu1 %154 }
 0x1ba   :  { %v161_v36 = vsel %vm148_vm4, %v530_v29, %v155_v35 }
 0x1bb   :  { %v142_v38 = vpop.permute.xlu0 %141 }
 0x1bc   :  { %v149_v40 = vsel %vm148_vm4, %v130_v31, %v142_v38 }
 0x1bd   :  { %v159_v37 = vpop.permute.xlu1 %158 }
 0x1be   :  { %v162_v39 = vsel %vm150_vm5, %v161_v36, %v159_v37 }
 0x1bf   :  { %v164_v41 = vrot.slane %v162_v39, 2 }
 0x1c1   :  { %v146_v42 = vpop.permute.xlu1 %145 }
 0x1c2   :  { %v151_v43 = vsel %vm150_vm5, %v149_v40, %v146_v42 }
 0x1c3   :  { %v167_v44 = vsel %vm166_vm6, %v151_v43, %v164_v41 }
 0x1c4   :  { %555 = vmatprep.mubr.msk.f32.mxu1 %vm187_vm7, %v167_v44 }
 0x1c5   :  { %556 = vmatmul.mubr.msk.f32.vlgmr.msra.gmra.mxu1 %vm187_vm7, %v164_v41 }
 0x285   :  { %v557_v47 = vpop.f32.mrf.mxu1 }
 0x286   :  { %v265_v48 = vadd.f32 %v557_v47, %v477_v46 }
 0x287   :  { %v259_v49 = vpop.f32.mrf.mxu1 }
 0x288   :  { %v269_v50 = vmax.f32 %v265_v48, 0.0  ;;  %v260_v51 = vadd.f32 %v477_v46, %v259_v49 }
 0x28a   :  { %v268_v52 = vmax.f32 %v260_v51, 0.0  ;;  %v281_v53 = vsel %vm280_vm9, %v269_v50, -inf }
 0x28c   :  { %v271_v54 = vsel %vm270_vm10, %v268_v52, -inf  ;;  %v279_v55 = vsel %vm278_vm11, %v268_v52, -inf }
 0x28d   :  { %v272_v56 = vrot.slane %v271_v54, 4  ;;  %v282_v57 = vmax.f32 %v279_v55, %v281_v53 }
 0x28f   :  { %v273_v58 = vmax.f32 %v271_v54, %v272_v56  ;;  %v283_v59 = vrot.slane %v282_v57, 4 }
 0x291   :  { %v274_v60 = vrot.slane %v273_v58, 2  ;;  %v284_v61 = vmax.f32 %v282_v57, %v283_v59 }
 0x293   :  { %v275_v62 = vmax.f32 %v273_v58, %v274_v60  ;;  %v285_v63 = vrot.slane %v284_v61, 2 }
 0x295   :  { %v276_v0 = vrot.slane %v275_v62, 1  ;;  %v286_v1 = vmax.f32 %v284_v61, %v285_v63 }
 0x297   :  { %v287_v2 = vrot.slane %v286_v1, 1  ;;  %v277_v3 = vmax.f32 %v275_v62, %v276_v0 }
 0x299   :  { %v288_v4 = vmax.f32 %v286_v1, %v287_v2 }
 0x29b   :  { %v290_v6 = vsel %vm289_vm12, %v277_v3, %v288_v4 }
 0x29c   :  { %561 = vmatmul.mubr.msk.f32.vlgmr.msra.gmra.mxu0 %vm299_vm13, %v290_v6 }
 0x29d   :  { %564 = vmatpush3.msra.mxu0 %v376_v5  ;;  %571 = vmatprep.mubr.msk.f32.mxu0 %vm607_vm8, %v604_v10 }
 0x29e   :  { %565 = vmatprep.subr.mxu0 %v604_v10 }
 0x29f   :  { %566 = vmatpush3.msra.mxu0 %v375_v7 }
 0x2a0   :  { %567 = vmatprep.subr.mxu0 %v604_v10 }
 0x2a1   :  { %568 = vmatpush3.msra.mxu0 %v374_v8 }
 0x2a2   :  { %569 = vmatprep.subr.mxu0 %v604_v10 }
 0x2a3   :  { %570 = vmatpush3.msra.mxu0 %v373_v9 }
 0x35c   :  { %v369_v12 = vpop.f32.mrf.mxu0 }
 0x35d   :  { %v370_v13 = vadd.f32 %v480_v11, %v369_v12 }
 0x35e   :  { %v562_v14 = vpop.f32.mrf.mxu0 }
 0x35f   :  { %572 = vmatmul.mubr.msk.f32.vlgmr.msra.gmra.mxu0 %vm148_vm4, %v370_v13 }
 0x41f   :  { %v453_v10 = vpop.f32.mrf.mxu0 }
 0x420   :  { %v454_v16 = vadd.f32 %v482_v15, %v453_v10 }
 0x421   :  { %v573_v17 = vpop.f32.mrf.mxu0 }
 0x422   :  { %457 = vst [vmem:[#allocation2] sm:$0x3] %v454_v16 }
 0x423   :  { %592 = shalt.err (!%p589_p4)
}
 0x424   :  { %467 = dma.vmem_to_hbm [thread:$0]  %s465_s15, 32, %s766_s8, [#allocation3]  }
 0x425   :  { %601 = dma.done.wait [#allocation3], 32  }
 0x426   :  { %602 = vsyncadd [#allocation3], 4294967264 }
 0x427   :  { %471 = vsyncpa [#allocation3], 1 }

</bundles_post_ra>
